<compile_context>
chip_gen: v6e
topology: v6e:2x2x1
jax: 0.10.0
libtpu: 0.0.40
codegen_flags: <defaults>
</compile_context>

<pallas_src>
import jax
import jax.numpy as jnp
from jax import lax
from jax.experimental import pallas as pl
from jax.experimental.pallas import tpu as pltpu

D_MODEL = 32          # d_model   (scaled down from 256)
D_FFN = 64            # d_ffn     (scaled down from 1024)
NUM_CLASSES = 8       # class_embed output dim (external head, chosen here)
SCORE_THR = 0.5       # stand-in for config.score_thr
WATERSHED = 0         # stand-in for config.watershed
LN_EPS = 1e-5
TILE_N_MAX = 1024     # large token tiles (working set << VMEM even on v7x)

# packed per-token output slab (f32, lane width 64, 47 real columns)
_OFF_TGT = 0
_OFF_LOGITS = _OFF_TGT + D_MODEL
_OFF_BOXES = _OFF_LOGITS + NUM_CLASSES
_OFF_NEXT = _OFF_BOXES + 4
_OFF_ALIVE = _OFF_NEXT + 1
_OFF_GATHER = _OFF_ALIVE + 1
_PACK_W = _OFF_GATHER + 1     # = 47
OUT_W = 64                    # padded packed width (halved vs previous 128)

# packed per-token aux input slab (f32): pts[0:4], mask[4], gather[5], pad[6:8]
AUX_W = 8
_AUX_PTS = 0
_AUX_MASK = 4
_AUX_GATHER = 5

# packed parameter slab: one row per small vector, padded to (16, 128) f32
PSLAB_ROWS = 16
PSLAB_COLS = 128
_ROW_N2G, _ROW_N2B = 0, 1
_ROW_N1G, _ROW_N1B = 2, 3
_ROW_N3G, _ROW_N3B = 4, 5
_ROW_B1 = 6
_ROW_B2 = 7
_ROW_BCB1 = 8          # [class bias (8) | bbox-MLP-1 bias (32)]
_ROW_BB2 = 9
_ROW_BB3 = 10


def _round_up(x, m):
    return ((x + m - 1) // m) * m


def _cdiv(a, b):
    return -(-a // b)


def _pick_tile(n):
    # >=2 grid steps whenever possible so v7x's two TensorCores both get work;
    # large tiles amortize the ~0.35us/step grid overhead on all generations.
    half = _cdiv(n, 2)
    return max(8, min(TILE_N_MAX, _round_up(half, 8)))


def _layer_norm(t, gamma, beta):
    # two-pass (PyTorch-style) variance, f32 math
    mu = jnp.mean(t, axis=-1, keepdims=True)
    c = t - mu
    var = jnp.mean(c * c, axis=-1, keepdims=True)
    return c * lax.rsqrt(var + LN_EPS) * gamma + beta


# ---------------------------------------------------------------------------
# Fused kernel: mask/norm2 -> mask/norm1 -> FFN+norm3 -> fused heads ->
#               recover_boxes -> score / mask bookkeeping, per token tile.
# Weights / parameter slab are resident in VMEM via constant index_maps.
# ---------------------------------------------------------------------------
def _fused_kernel(tgt_ref, aux_ref, pslab_ref,
                  w1_ref, w2_ref, wcb1_ref, wb2_ref, wb3_ref,
                  out_ref):
    f32 = jnp.float32
    bf16 = jnp.bfloat16
    d, f, C = D_MODEL, D_FFN, NUM_CLASSES

    pts = aux_ref[:, _AUX_PTS:_AUX_PTS + 4]
    mask = aux_ref[:, _AUX_MASK:_AUX_MASK + 1]
    gather_in = aux_ref[:, _AUX_GATHER:_AUX_GATHER + 1]

    # relation_net receives {'tgt': tgt * cur_all_mask}; pass tokens through.
    # TODO(synk): relation_net (build_DehomoCodingGenerator) is not defined in the
    # reference source; only its input masking is applied here.
    x = tgt_ref[...] * mask

    # tgt = norm2((tgt + dropout2(local_attn(...))) * cur_all_mask)
    # TODO(synk): LocalMHAttention is not defined in the reference source; its
    # residual branch is taken as zero.  x is already masked (mask in {0,1}),
    # so the extra * mask is dropped.
    x = _layer_norm(x, pslab_ref[_ROW_N2G:_ROW_N2G + 1, :d],
                    pslab_ref[_ROW_N2B:_ROW_N2B + 1, :d])

    # tgt = norm1((tgt + dropout1(cross_attn(...))) * cur_all_mask)
    # TODO(synk): MSDeformAttn is not defined in the reference source; its
    # residual branch is taken as zero.
    x = _layer_norm(x * mask, pslab_ref[_ROW_N1G:_ROW_N1G + 1, :d],
                    pslab_ref[_ROW_N1B:_ROW_N1B + 1, :d])

    # forward_ffn: linear1 -> relu -> linear2 -> +residual -> norm3  (bf16 on MXU)
    xb = x.astype(bf16)
    h = jnp.maximum(
        jnp.dot(xb, w1_ref[...], preferred_element_type=f32)
        + pslab_ref[_ROW_B1:_ROW_B1 + 1, :f], 0.0)
    t2 = jnp.dot(h.astype(bf16), w2_ref[...], preferred_element_type=f32) \
        + pslab_ref[_ROW_B2:_ROW_B2 + 1, :d]
    x = _layer_norm(x + t2, pslab_ref[_ROW_N3G:_ROW_N3G + 1, :d],
                    pslab_ref[_ROW_N3B:_ROW_N3B + 1, :d])

    # fused class head + bbox-MLP layer 1: one (d, C+d) matmul, then slice
    xb = x.astype(bf16)
    y = jnp.dot(xb, wcb1_ref[...], preferred_element_type=f32) \
        + pslab_ref[_ROW_BCB1:_ROW_BCB1 + 1, :C + d]
    logits = y[:, :C]
    hb = jnp.maximum(y[:, C:C + d], 0.0)
    hb = jnp.maximum(
        jnp.dot(hb.astype(bf16), wb2_ref[...], preferred_element_type=f32)
        + pslab_ref[_ROW_BB2:_ROW_BB2 + 1, :d], 0.0)
    pred_bbox = jnp.dot(hb.astype(bf16), wb3_ref[...], preferred_element_type=f32) \
        + pslab_ref[_ROW_BB3:_ROW_BB3 + 1, :4]

    # recover_boxes: pred_bbox += inverse_sigmoid(points); sigmoid (4-d reference)
    p = jnp.clip(pts, 0.0, 1.0)
    reference = jnp.log(jnp.maximum(p, 1e-5) / jnp.maximum(1.0 - p, 1e-5))
    boxes = jax.nn.sigmoid(pred_bbox + reference)

    # scores from the fresh (pre-restoration) logits, exactly as in the reference.
    # sigmoid is monotone: sigmoid(rowmax(logits)) == max(sigmoid(logits))
    scores = jax.nn.sigmoid(jnp.max(logits, axis=-1, keepdims=True))
    alive = (scores >= SCORE_THR).astype(f32)
    # (scores >= 0.0) is kept verbatim from the reference (always-true for sigmoid)
    next_mask = (mask - alive) * (scores >= 0.0).astype(f32)
    gather_out = gather_in + alive

    # Piecewise slice stores into a 64-lane packed slab (half the HBM writeback
    # of a 128-wide slab; no large concatenated live value at big tiles).
    out_ref[:, _OFF_TGT:_OFF_TGT + d] = x
    out_ref[:, _OFF_LOGITS:_OFF_LOGITS + C] = logits
    out_ref[:, _OFF_BOXES:_OFF_BOXES + 4] = boxes
    out_ref[:, _OFF_NEXT:_OFF_NEXT + 1] = next_mask
    out_ref[:, _OFF_ALIVE:_OFF_ALIVE + 1] = alive
    out_ref[:, _OFF_GATHER:_OFF_GATHER + 1] = gather_out
    out_ref[:, _PACK_W:] = jnp.zeros((x.shape[0], OUT_W - _PACK_W), f32)


def _fused_forward(p, tgt2d, aux2d, tile_n):
    n_pad, d = tgt2d.shape
    C = NUM_CLASSES
    tok = lambda i: (i, 0)    # token-tiled operands
    res = lambda i: (0, 0)    # weights / parameter slab resident across the grid
    return pl.pallas_call(
        _fused_kernel,
        out_shape=jax.ShapeDtypeStruct((n_pad, OUT_W), jnp.float32),
        grid_spec=pltpu.PrefetchScalarGridSpec(
            num_scalar_prefetch=0,
            grid=(n_pad // tile_n,),
            in_specs=[
                pl.BlockSpec((tile_n, d), tok),                    # tgt
                pl.BlockSpec((tile_n, AUX_W), tok),                # packed aux (pts/mask/gather)
                pl.BlockSpec((PSLAB_ROWS, PSLAB_COLS), res),       # packed LN params + biases
                pl.BlockSpec((d, D_FFN), res),                     # linear1 weight
                pl.BlockSpec((D_FFN, d), res),                     # linear2 weight
                pl.BlockSpec((d, C + d), res),                     # fused [class | bbox1] weight
                pl.BlockSpec((d, d), res),                         # bbox MLP 2 weight
                pl.BlockSpec((d, 4), res),                         # bbox MLP 3 weight
            ],
            out_specs=pl.BlockSpec((tile_n, OUT_W), tok),
        ),
        compiler_params=pltpu.CompilerParams(
            dimension_semantics=("parallel",),
            vmem_limit_bytes=32 * 1024 * 1024),
    )(tgt2d, aux2d, p['pslab'], p['w1'], p['w2'], p['wcb1'], p['wb2'], p['wb3'])


# ---------------------------------------------------------------------------
# Parameter init (deterministic, synthetic).  MXU weights bf16, slab f32.
# ---------------------------------------------------------------------------
def init_params(key):
    ks = jax.random.split(key, 8)
    s = 0.05
    d, f, C = D_MODEL, D_FFN, NUM_CLASSES
    bf16 = jnp.bfloat16

    w1 = (s * jax.random.normal(ks[0], (d, f), jnp.float32)).astype(bf16)
    w2 = (s * jax.random.normal(ks[1], (f, d), jnp.float32)).astype(bf16)
    wc = (s * jax.random.normal(ks[2], (d, C), jnp.float32)).astype(bf16)
    wb1 = (s * jax.random.normal(ks[3], (d, d), jnp.float32)).astype(bf16)
    wb2 = (s * jax.random.normal(ks[4], (d, d), jnp.float32)).astype(bf16)
    wb3 = (s * jax.random.normal(ks[5], (d, 4), jnp.float32)).astype(bf16)
    wcb1 = jnp.concatenate([wc, wb1], axis=1)   # fused class + bbox-MLP-1 head

    def row(vec):
        vec = jnp.asarray(vec, jnp.float32)
        return jnp.zeros((PSLAB_COLS,), jnp.float32).at[:vec.shape[0]].set(vec)

    rows = [
        row(jnp.ones((d,))), row(jnp.zeros((d,))),       # norm2 gamma, beta
        row(jnp.ones((d,))), row(jnp.zeros((d,))),       # norm1 gamma, beta
        row(jnp.ones((d,))), row(jnp.zeros((d,))),       # norm3 gamma, beta
        row(jnp.zeros((f,))),                            # linear1 bias
        row(jnp.zeros((d,))),                            # linear2 bias
        row(jnp.zeros((C + d,))),                        # [class bias | bbox1 bias]
        row(jnp.zeros((d,))),                            # bbox2 bias
        row(jnp.zeros((4,))),                            # bbox3 bias
    ]
    rows += [jnp.zeros((PSLAB_COLS,), jnp.float32)] * (PSLAB_ROWS - len(rows))
    pslab = jnp.stack(rows, axis=0)

    return {'pslab': pslab, 'w1': w1, 'w2': w2, 'wcb1': wcb1, 'wb2': wb2, 'wb3': wb3}


# ---------------------------------------------------------------------------
# SharedDecHead.forward
# ---------------------------------------------------------------------------
def shared_dec_head_forward(params, tgt, query_pos, reference_points,
                            cur_all_mask, old_pred_logits, gather_mask,
                            level=1):
    assert level >= WATERSHED
    # TODO(synk): query_pos is only consumed by the undefined attention submodules,
    # so it is unused while those branches are stubbed.
    del query_pos
    bs, nq, d = tgt.shape
    C = NUM_CLASSES
    N = bs * nq

    tgt2d = tgt.reshape(N, d).astype(jnp.float32)
    mask2d = cur_all_mask.reshape(N, 1).astype(jnp.float32)
    pts2d = reference_points.reshape(N, 4).astype(jnp.float32)
    gather2d = gather_mask.reshape(N, 1).astype(jnp.float32)
    # pack the narrow per-token inputs into one lane-packed aux operand
    aux2d = jnp.concatenate(
        [pts2d, mask2d, gather2d, jnp.zeros((N, AUX_W - 6), jnp.float32)], axis=-1)

    tile_n = _pick_tile(N)
    n_pad = _round_up(N, tile_n)
    if n_pad != N:
        padr = n_pad - N
        tgt2d = jnp.pad(tgt2d, ((0, padr), (0, 0)))
        aux2d = jnp.pad(aux2d, ((0, padr), (0, 0)))

    packed = _fused_forward(params, tgt2d, aux2d, tile_n)[:N]

    tgt_out = packed[:, _OFF_TGT:_OFF_TGT + d].reshape(bs, nq, d)
    logits = packed[:, _OFF_LOGITS:_OFF_LOGITS + C].reshape(bs, nq, C)
    boxes = packed[:, _OFF_BOXES:_OFF_BOXES + 4].reshape(bs, nq, 4)
    next_mask = packed[:, _OFF_NEXT:_OFF_NEXT + 1].reshape(bs, nq, 1)
    alive_mask = packed[:, _OFF_ALIVE:_OFF_ALIVE + 1].reshape(bs, nq, 1)
    gather_out = packed[:, _OFF_GATHER:_OFF_GATHER + 1].reshape(bs, nq, 1)

    # pred_logits[~cur_all_mask] = old_pred_logits[~cur_all_mask]
    # (done wrapper-side in f32 so restored values are exact and old_pred_logits
    #  never has to be streamed through the kernel)
    logits = jnp.where(cur_all_mask > 0, logits, old_pred_logits.astype(jnp.float32))

    out_container = {
        'pred_logits': logits,
        'pred_boxes': boxes,
        'mask': cur_all_mask,
        'cur_all_mask': cur_all_mask,
        'next_mask': next_mask,
        'alive_mask': alive_mask,
        'gather_mask': gather_out,
    }
    return tgt_out, out_container


if __name__ == "__main__":
    bs, nq, d = 2, 16, D_MODEL
    key = jax.random.PRNGKey(0)
    k_p, k_t, k_q, k_r, k_m, k_l = jax.random.split(key, 6)

    params = init_params(k_p)
    tgt = jax.random.normal(k_t, (bs, nq, d), jnp.float32)
    query_pos = jax.random.normal(k_q, (bs, nq, d), jnp.float32)
    reference_points = jax.nn.sigmoid(jax.random.normal(k_r, (bs, nq, 4), jnp.float32))
    cur_all_mask = (jax.random.uniform(k_m, (bs, nq, 1)) > 0.3).astype(jnp.float32)
    old_pred_logits = jax.random.normal(k_l, (bs, nq, NUM_CLASSES), jnp.float32)
    gather_mask = jnp.zeros((bs, nq, 1), jnp.float32)

    fwd = jax.jit(shared_dec_head_forward, static_argnames=('level',))
    tgt_out, container = fwd(params, tgt, query_pos, reference_points,
                             cur_all_mask, old_pred_logits, gather_mask, level=1)

    jax.block_until_ready(tgt_out)
    for k in ('pred_logits', 'pred_boxes', 'next_mask', 'alive_mask', 'gather_mask'):
        jax.block_until_ready(container[k])
    print("KERNEL_OK")
</pallas_src>

<mosaic_0001>
module attributes {stable_mosaic.version = 11 : i64} {
  func.func @_fused_kernel(%arg0: i32, %arg1: memref<16x32xf32, #tpu.memory_space<vmem>>, %arg2: memref<16x8xf32, #tpu.memory_space<vmem>>, %arg3: memref<16x128xf32, #tpu.memory_space<vmem>>, %arg4: memref<32x64xbf16, #tpu.memory_space<vmem>>, %arg5: memref<64x32xbf16, #tpu.memory_space<vmem>>, %arg6: memref<32x40xbf16, #tpu.memory_space<vmem>>, %arg7: memref<32x32xbf16, #tpu.memory_space<vmem>>, %arg8: memref<32x4xbf16, #tpu.memory_space<vmem>>, %arg9: memref<16x64xf32, #tpu.memory_space<vmem>>) attributes {dimension_semantics = [#tpu.dimension_semantics<parallel>], iteration_bounds = array<i64: 2>, scalar_prefetch = 0 : i64, scratch_operands = 0 : i64, tpu.core_type = #tpu.core_type<tc>, window_params = [{transform_indices = @transform_0, window_bounds = array<i64: 16, 32>}, {transform_indices = @transform_1, window_bounds = array<i64: 16, 8>}, {pipeline_mode = #tpu.pipeline_mode<synchronous>, transform_indices = @transform_2, window_bounds = array<i64: 16, 128>}, {pipeline_mode = #tpu.pipeline_mode<synchronous>, transform_indices = @transform_3, window_bounds = array<i64: 32, 64>}, {pipeline_mode = #tpu.pipeline_mode<synchronous>, transform_indices = @transform_4, window_bounds = array<i64: 64, 32>}, {pipeline_mode = #tpu.pipeline_mode<synchronous>, transform_indices = @transform_5, window_bounds = array<i64: 32, 40>}, {pipeline_mode = #tpu.pipeline_mode<synchronous>, transform_indices = @transform_6, window_bounds = array<i64: 32, 32>}, {pipeline_mode = #tpu.pipeline_mode<synchronous>, transform_indices = @transform_7, window_bounds = array<i64: 32, 4>}, {transform_indices = @transform_8, window_bounds = array<i64: 16, 64>}]} {
    %c0 = arith.constant 0 : index
    %c0_0 = arith.constant 0 : index
    %0 = vector.load %arg2[%c0, %c0_0] : memref<16x8xf32, #tpu.memory_space<vmem>>, vector<16x4xf32>
    %c0_1 = arith.constant 0 : index
    %c4 = arith.constant 4 : index
    %1 = vector.load %arg2[%c0_1, %c4] : memref<16x8xf32, #tpu.memory_space<vmem>>, vector<16x1xf32>
    %c0_2 = arith.constant 0 : index
    %c5 = arith.constant 5 : index
    %2 = vector.load %arg2[%c0_2, %c5] : memref<16x8xf32, #tpu.memory_space<vmem>>, vector<16x1xf32>
    %c0_3 = arith.constant 0 : index
    %c0_4 = arith.constant 0 : index
    %3 = vector.load %arg1[%c0_3, %c0_4] : memref<16x32xf32, #tpu.memory_space<vmem>>, vector<16x32xf32>
    %4 = vector.broadcast %1 : vector<16x1xf32> to vector<16x32xf32>
    %5 = arith.mulf %3, %4 : vector<16x32xf32>
    %c0_5 = arith.constant 0 : index
    %c0_6 = arith.constant 0 : index
    %6 = vector.load %arg3[%c0_5, %c0_6] : memref<16x128xf32, #tpu.memory_space<vmem>>, vector<1x32xf32>
    %c1 = arith.constant 1 : index
    %c0_7 = arith.constant 0 : index
    %7 = vector.load %arg3[%c1, %c0_7] : memref<16x128xf32, #tpu.memory_space<vmem>>, vector<1x32xf32>
    %cst = arith.constant dense<0.000000e+00> : vector<16xf32>
    %8 = vector.multi_reduction <add>, %5, %cst [1] : vector<16x32xf32> to vector<16xf32>
    %9 = vector.shape_cast %8 : vector<16xf32> to vector<16x1xf32>
    %cst_8 = arith.constant 3.200000e+01 : f32
    %10 = vector.broadcast %cst_8 : f32 to vector<16x1xf32>
    %11 = arith.divf %9, %10 : vector<16x1xf32>
    %12 = vector.broadcast %11 : vector<16x1xf32> to vector<16x32xf32>
    %13 = arith.subf %5, %12 : vector<16x32xf32>
    %14 = arith.mulf %13, %13 : vector<16x32xf32>
    %cst_9 = arith.constant dense<0.000000e+00> : vector<16xf32>
    %15 = vector.multi_reduction <add>, %14, %cst_9 [1] : vector<16x32xf32> to vector<16xf32>
    %16 = vector.shape_cast %15 : vector<16xf32> to vector<16x1xf32>
    %cst_10 = arith.constant 3.200000e+01 : f32
    %17 = vector.broadcast %cst_10 : f32 to vector<16x1xf32>
    %18 = arith.divf %16, %17 : vector<16x1xf32>
    %cst_11 = arith.constant 9.99999974E-6 : f32
    %19 = vector.broadcast %cst_11 : f32 to vector<16x1xf32>
    %20 = arith.addf %18, %19 : vector<16x1xf32>
    %21 = math.rsqrt %20 : vector<16x1xf32>
    %22 = vector.broadcast %21 : vector<16x1xf32> to vector<16x32xf32>
    %23 = arith.mulf %13, %22 : vector<16x32xf32>
    %24 = vector.broadcast %6 : vector<1x32xf32> to vector<16x32xf32>
    %25 = arith.mulf %23, %24 : vector<16x32xf32>
    %26 = vector.broadcast %7 : vector<1x32xf32> to vector<16x32xf32>
    %27 = arith.addf %25, %26 : vector<16x32xf32>
    %28 = vector.broadcast %1 : vector<16x1xf32> to vector<16x32xf32>
    %29 = arith.mulf %27, %28 : vector<16x32xf32>
    %c2 = arith.constant 2 : index
    %c0_12 = arith.constant 0 : index
    %30 = vector.load %arg3[%c2, %c0_12] : memref<16x128xf32, #tpu.memory_space<vmem>>, vector<1x32xf32>
    %c3 = arith.constant 3 : index
    %c0_13 = arith.constant 0 : index
    %31 = vector.load %arg3[%c3, %c0_13] : memref<16x128xf32, #tpu.memory_space<vmem>>, vector<1x32xf32>
    %cst_14 = arith.constant dense<0.000000e+00> : vector<16xf32>
    %32 = vector.multi_reduction <add>, %29, %cst_14 [1] : vector<16x32xf32> to vector<16xf32>
    %33 = vector.shape_cast %32 : vector<16xf32> to vector<16x1xf32>
    %cst_15 = arith.constant 3.200000e+01 : f32
    %34 = vector.broadcast %cst_15 : f32 to vector<16x1xf32>
    %35 = arith.divf %33, %34 : vector<16x1xf32>
    %36 = vector.broadcast %35 : vector<16x1xf32> to vector<16x32xf32>
    %37 = arith.subf %29, %36 : vector<16x32xf32>
    %38 = arith.mulf %37, %37 : vector<16x32xf32>
    %cst_16 = arith.constant dense<0.000000e+00> : vector<16xf32>
    %39 = vector.multi_reduction <add>, %38, %cst_16 [1] : vector<16x32xf32> to vector<16xf32>
    %40 = vector.shape_cast %39 : vector<16xf32> to vector<16x1xf32>
    %cst_17 = arith.constant 3.200000e+01 : f32
    %41 = vector.broadcast %cst_17 : f32 to vector<16x1xf32>
    %42 = arith.divf %40, %41 : vector<16x1xf32>
    %cst_18 = arith.constant 9.99999974E-6 : f32
    %43 = vector.broadcast %cst_18 : f32 to vector<16x1xf32>
    %44 = arith.addf %42, %43 : vector<16x1xf32>
    %45 = math.rsqrt %44 : vector<16x1xf32>
    %46 = vector.broadcast %45 : vector<16x1xf32> to vector<16x32xf32>
    %47 = arith.mulf %37, %46 : vector<16x32xf32>
    %48 = vector.broadcast %30 : vector<1x32xf32> to vector<16x32xf32>
    %49 = arith.mulf %47, %48 : vector<16x32xf32>
    %50 = vector.broadcast %31 : vector<1x32xf32> to vector<16x32xf32>
    %51 = arith.addf %49, %50 : vector<16x32xf32>
    %52 = arith.truncf %51 : vector<16x32xf32> to vector<16x32xbf16>
    %c0_19 = arith.constant 0 : index
    %c0_20 = arith.constant 0 : index
    %53 = vector.load %arg4[%c0_19, %c0_20] : memref<32x64xbf16, #tpu.memory_space<vmem>>, vector<32x64xbf16>
    %cst_21 = arith.constant dense<0.000000e+00> : vector<16x64xf32>
    %54 = tpu.matmul %52, %53, %cst_21 {dimension_numbers = #tpu.dot_dimension_numbers<[1], [0], [0], [1], [0, 0, 1, 1], [], []>} : vector<16x32xbf16>, vector<32x64xbf16>, vector<16x64xf32> -> vector<16x64xf32>
    %c6 = arith.constant 6 : index
    %c0_22 = arith.constant 0 : index
    %55 = vector.load %arg3[%c6, %c0_22] : memref<16x128xf32, #tpu.memory_space<vmem>>, vector<1x64xf32>
    %56 = vector.broadcast %55 : vector<1x64xf32> to vector<16x64xf32>
    %57 = arith.addf %54, %56 : vector<16x64xf32>
    %cst_23 = arith.constant 0.000000e+00 : f32
    %58 = vector.broadcast %cst_23 : f32 to vector<16x64xf32>
    %59 = arith.maximumf %57, %58 : vector<16x64xf32>
    %60 = arith.truncf %59 : vector<16x64xf32> to vector<16x64xbf16>
    %c0_24 = arith.constant 0 : index
    %c0_25 = arith.constant 0 : index
    %61 = vector.load %arg5[%c0_24, %c0_25] : memref<64x32xbf16, #tpu.memory_space<vmem>>, vector<64x32xbf16>
    %cst_26 = arith.constant dense<0.000000e+00> : vector<16x32xf32>
    %62 = tpu.matmul %60, %61, %cst_26 {dimension_numbers = #tpu.dot_dimension_numbers<[1], [0], [0], [1], [0, 0, 1, 1], [], []>} : vector<16x64xbf16>, vector<64x32xbf16>, vector<16x32xf32> -> vector<16x32xf32>
    %c7 = arith.constant 7 : index
    %c0_27 = arith.constant 0 : index
    %63 = vector.load %arg3[%c7, %c0_27] : memref<16x128xf32, #tpu.memory_space<vmem>>, vector<1x32xf32>
    %64 = vector.broadcast %63 : vector<1x32xf32> to vector<16x32xf32>
    %65 = arith.addf %62, %64 : vector<16x32xf32>
    %66 = arith.addf %51, %65 : vector<16x32xf32>
    %c4_28 = arith.constant 4 : index
    %c0_29 = arith.constant 0 : index
    %67 = vector.load %arg3[%c4_28, %c0_29] : memref<16x128xf32, #tpu.memory_space<vmem>>, vector<1x32xf32>
    %c5_30 = arith.constant 5 : index
    %c0_31 = arith.constant 0 : index
    %68 = vector.load %arg3[%c5_30, %c0_31] : memref<16x128xf32, #tpu.memory_space<vmem>>, vector<1x32xf32>
    %cst_32 = arith.constant dense<0.000000e+00> : vector<16xf32>
    %69 = vector.multi_reduction <add>, %66, %cst_32 [1] : vector<16x32xf32> to vector<16xf32>
    %70 = vector.shape_cast %69 : vector<16xf32> to vector<16x1xf32>
    %cst_33 = arith.constant 3.200000e+01 : f32
    %71 = vector.broadcast %cst_33 : f32 to vector<16x1xf32>
    %72 = arith.divf %70, %71 : vector<16x1xf32>
    %73 = vector.broadcast %72 : vector<16x1xf32> to vector<16x32xf32>
    %74 = arith.subf %66, %73 : vector<16x32xf32>
    %75 = arith.mulf %74, %74 : vector<16x32xf32>
    %cst_34 = arith.constant dense<0.000000e+00> : vector<16xf32>
    %76 = vector.multi_reduction <add>, %75, %cst_34 [1] : vector<16x32xf32> to vector<16xf32>
    %77 = vector.shape_cast %76 : vector<16xf32> to vector<16x1xf32>
    %cst_35 = arith.constant 3.200000e+01 : f32
    %78 = vector.broadcast %cst_35 : f32 to vector<16x1xf32>
    %79 = arith.divf %77, %78 : vector<16x1xf32>
    %cst_36 = arith.constant 9.99999974E-6 : f32
    %80 = vector.broadcast %cst_36 : f32 to vector<16x1xf32>
    %81 = arith.addf %79, %80 : vector<16x1xf32>
    %82 = math.rsqrt %81 : vector<16x1xf32>
    %83 = vector.broadcast %82 : vector<16x1xf32> to vector<16x32xf32>
    %84 = arith.mulf %74, %83 : vector<16x32xf32>
    %85 = vector.broadcast %67 : vector<1x32xf32> to vector<16x32xf32>
    %86 = arith.mulf %84, %85 : vector<16x32xf32>
    %87 = vector.broadcast %68 : vector<1x32xf32> to vector<16x32xf32>
    %88 = arith.addf %86, %87 : vector<16x32xf32>
    %89 = arith.truncf %88 : vector<16x32xf32> to vector<16x32xbf16>
    %c0_37 = arith.constant 0 : index
    %c0_38 = arith.constant 0 : index
    %90 = vector.load %arg6[%c0_37, %c0_38] : memref<32x40xbf16, #tpu.memory_space<vmem>>, vector<32x40xbf16>
    %cst_39 = arith.constant dense<0.000000e+00> : vector<16x40xf32>
    %91 = tpu.matmul %89, %90, %cst_39 {dimension_numbers = #tpu.dot_dimension_numbers<[1], [0], [0], [1], [0, 0, 1, 1], [], []>} : vector<16x32xbf16>, vector<32x40xbf16>, vector<16x40xf32> -> vector<16x40xf32>
    %c8 = arith.constant 8 : index
    %c0_40 = arith.constant 0 : index
    %92 = vector.load %arg3[%c8, %c0_40] : memref<16x128xf32, #tpu.memory_space<vmem>>, vector<1x40xf32>
    %93 = vector.broadcast %92 : vector<1x40xf32> to vector<16x40xf32>
    %94 = arith.addf %91, %93 : vector<16x40xf32>
    %95 = vector.extract_strided_slice %94 {offsets = [0, 0], sizes = [16, 8], strides = [1, 1]} : vector<16x40xf32> to vector<16x8xf32>
    %96 = vector.extract_strided_slice %94 {offsets = [0, 8], sizes = [16, 32], strides = [1, 1]} : vector<16x40xf32> to vector<16x32xf32>
    %cst_41 = arith.constant 0.000000e+00 : f32
    %97 = vector.broadcast %cst_41 : f32 to vector<16x32xf32>
    %98 = arith.maximumf %96, %97 : vector<16x32xf32>
    %99 = arith.truncf %98 : vector<16x32xf32> to vector<16x32xbf16>
    %c0_42 = arith.constant 0 : index
    %c0_43 = arith.constant 0 : index
    %100 = vector.load %arg7[%c0_42, %c0_43] : memref<32x32xbf16, #tpu.memory_space<vmem>>, vector<32x32xbf16>
    %cst_44 = arith.constant dense<0.000000e+00> : vector<16x32xf32>
    %101 = tpu.matmul %99, %100, %cst_44 {dimension_numbers = #tpu.dot_dimension_numbers<[1], [0], [0], [1], [0, 0, 1, 1], [], []>} : vector<16x32xbf16>, vector<32x32xbf16>, vector<16x32xf32> -> vector<16x32xf32>
    %c9 = arith.constant 9 : index
    %c0_45 = arith.constant 0 : index
    %102 = vector.load %arg3[%c9, %c0_45] : memref<16x128xf32, #tpu.memory_space<vmem>>, vector<1x32xf32>
    %103 = vector.broadcast %102 : vector<1x32xf32> to vector<16x32xf32>
    %104 = arith.addf %101, %103 : vector<16x32xf32>
    %cst_46 = arith.constant 0.000000e+00 : f32
    %105 = vector.broadcast %cst_46 : f32 to vector<16x32xf32>
    %106 = arith.maximumf %104, %105 : vector<16x32xf32>
    %107 = arith.truncf %106 : vector<16x32xf32> to vector<16x32xbf16>
    %c0_47 = arith.constant 0 : index
    %c0_48 = arith.constant 0 : index
    %108 = vector.load %arg8[%c0_47, %c0_48] : memref<32x4xbf16, #tpu.memory_space<vmem>>, vector<32x4xbf16>
    %cst_49 = arith.constant dense<0.000000e+00> : vector<16x4xf32>
    %109 = tpu.matmul %107, %108, %cst_49 {dimension_numbers = #tpu.dot_dimension_numbers<[1], [0], [0], [1], [0, 0, 1, 1], [], []>} : vector<16x32xbf16>, vector<32x4xbf16>, vector<16x4xf32> -> vector<16x4xf32>
    %c10 = arith.constant 10 : index
    %c0_50 = arith.constant 0 : index
    %110 = vector.load %arg3[%c10, %c0_50] : memref<16x128xf32, #tpu.memory_space<vmem>>, vector<1x4xf32>
    %111 = vector.broadcast %110 : vector<1x4xf32> to vector<16x4xf32>
    %112 = arith.addf %109, %111 : vector<16x4xf32>
    %cst_51 = arith.constant 0.000000e+00 : f32
    %cst_52 = arith.constant 1.000000e+00 : f32
    %113 = vector.broadcast %cst_51 : f32 to vector<16x4xf32>
    %114 = arith.maximumf %113, %0 : vector<16x4xf32>
    %115 = vector.broadcast %cst_52 : f32 to vector<16x4xf32>
    %116 = arith.minimumf %115, %114 : vector<16x4xf32>
    %cst_53 = arith.constant 9.99999974E-6 : f32
    %117 = vector.broadcast %cst_53 : f32 to vector<16x4xf32>
    %118 = arith.maximumf %116, %117 : vector<16x4xf32>
    %cst_54 = arith.constant 1.000000e+00 : f32
    %119 = vector.broadcast %cst_54 : f32 to vector<16x4xf32>
    %120 = arith.subf %119, %116 : vector<16x4xf32>
    %cst_55 = arith.constant 9.99999974E-6 : f32
    %121 = vector.broadcast %cst_55 : f32 to vector<16x4xf32>
    %122 = arith.maximumf %120, %121 : vector<16x4xf32>
    %123 = arith.divf %118, %122 : vector<16x4xf32>
    %124 = math.log %123 : vector<16x4xf32>
    %125 = arith.addf %112, %124 : vector<16x4xf32>
    %126 = arith.negf %125 : vector<16x4xf32>
    %127 = math.exp %126 : vector<16x4xf32>
    %cst_56 = arith.constant 1.000000e+00 : f32
    %128 = vector.broadcast %cst_56 : f32 to vector<16x4xf32>
    %129 = arith.addf %128, %127 : vector<16x4xf32>
    %130 = arith.divf %128, %129 : vector<16x4xf32>
    %cst_57 = arith.constant dense<0xFF800000> : vector<16xf32>
    %131 = vector.multi_reduction <maximumf>, %95, %cst_57 [1] : vector<16x8xf32> to vector<16xf32>
    %132 = vector.shape_cast %131 : vector<16xf32> to vector<16x1xf32>
    %133 = arith.negf %132 : vector<16x1xf32>
    %134 = math.exp %133 : vector<16x1xf32>
    %cst_58 = arith.constant 1.000000e+00 : f32
    %135 = vector.broadcast %cst_58 : f32 to vector<16x1xf32>
    %136 = arith.addf %135, %134 : vector<16x1xf32>
    %137 = arith.divf %135, %136 : vector<16x1xf32>
    %cst_59 = arith.constant 5.000000e-01 : f32
    %138 = vector.broadcast %cst_59 : f32 to vector<16x1xf32>
    %139 = arith.cmpf oge, %137, %138 : vector<16x1xf32>
    %140 = arith.extui %139 : vector<16x1xi1> to vector<16x1xi32>
    %141 = arith.sitofp %140 : vector<16x1xi32> to vector<16x1xf32>
    %142 = arith.subf %1, %141 : vector<16x1xf32>
    %cst_60 = arith.constant 0.000000e+00 : f32
    %143 = vector.broadcast %cst_60 : f32 to vector<16x1xf32>
    %144 = arith.cmpf oge, %137, %143 : vector<16x1xf32>
    %145 = arith.extui %144 : vector<16x1xi1> to vector<16x1xi32>
    %146 = arith.sitofp %145 : vector<16x1xi32> to vector<16x1xf32>
    %147 = arith.mulf %142, %146 : vector<16x1xf32>
    %148 = arith.addf %2, %141 : vector<16x1xf32>
    %c0_61 = arith.constant 0 : index
    %c0_62 = arith.constant 0 : index
    %149 = vector.load %arg9[%c0_61, %c0_62] : memref<16x64xf32, #tpu.memory_space<vmem>>, vector<16x32xf32>
    tpu.vector_store %arg9[%c0_61, %c0_62], %88 {strides = array<i32>} : memref<16x64xf32, #tpu.memory_space<vmem>>, vector<16x32xf32>,
    %c0_63 = arith.constant 0 : index
    %c32 = arith.constant 32 : index
    %150 = vector.load %arg9[%c0_63, %c32] : memref<16x64xf32, #tpu.memory_space<vmem>>, vector<16x8xf32>
    tpu.vector_store %arg9[%c0_63, %c32], %95 {strides = array<i32>} : memref<16x64xf32, #tpu.memory_space<vmem>>, vector<16x8xf32>,
    %c0_64 = arith.constant 0 : index
    %c40 = arith.constant 40 : index
    %151 = vector.load %arg9[%c0_64, %c40] : memref<16x64xf32, #tpu.memory_space<vmem>>, vector<16x4xf32>
    tpu.vector_store %arg9[%c0_64, %c40], %130 {strides = array<i32>} : memref<16x64xf32, #tpu.memory_space<vmem>>, vector<16x4xf32>,
    %c0_65 = arith.constant 0 : index
    %c44 = arith.constant 44 : index
    %152 = vector.load %arg9[%c0_65, %c44] : memref<16x64xf32, #tpu.memory_space<vmem>>, vector<16x1xf32>
    tpu.vector_store %arg9[%c0_65, %c44], %147 {strides = array<i32>} : memref<16x64xf32, #tpu.memory_space<vmem>>, vector<16x1xf32>,
    %c0_66 = arith.constant 0 : index
    %c45 = arith.constant 45 : index
    %153 = vector.load %arg9[%c0_66, %c45] : memref<16x64xf32, #tpu.memory_space<vmem>>, vector<16x1xf32>
    tpu.vector_store %arg9[%c0_66, %c45], %141 {strides = array<i32>} : memref<16x64xf32, #tpu.memory_space<vmem>>, vector<16x1xf32>,
    %c0_67 = arith.constant 0 : index
    %c46 = arith.constant 46 : index
    %154 = vector.load %arg9[%c0_67, %c46] : memref<16x64xf32, #tpu.memory_space<vmem>>, vector<16x1xf32>
    tpu.vector_store %arg9[%c0_67, %c46], %148 {strides = array<i32>} : memref<16x64xf32, #tpu.memory_space<vmem>>, vector<16x1xf32>,
    %cst_68 = arith.constant 0.000000e+00 : f32
    %155 = vector.broadcast %cst_68 : f32 to vector<16x17xf32>
    %c0_69 = arith.constant 0 : index
    %c47 = arith.constant 47 : index
    %156 = vector.load %arg9[%c0_69, %c47] : memref<16x64xf32, #tpu.memory_space<vmem>>, vector<16x17xf32>
    tpu.vector_store %arg9[%c0_69, %c47], %155 {strides = array<i32>} : memref<16x64xf32, #tpu.memory_space<vmem>>, vector<16x17xf32>,
    return
  }
  func.func @transform_0(%arg0: i32) -> (i32, i32) {
    %c0_i32 = arith.constant 0 : i32
    %c0_i32_0 = arith.constant 0 : i32
    return %arg0, %c0_i32 : i32, i32
  }
  func.func @transform_1(%arg0: i32) -> (i32, i32) {
    %c0_i32 = arith.constant 0 : i32
    %c0_i32_0 = arith.constant 0 : i32
    return %arg0, %c0_i32 : i32, i32
  }
  func.func @transform_2(%arg0: i32) -> (i32, i32) {
    %c0_i32 = arith.constant 0 : i32
    %c0_i32_0 = arith.constant 0 : i32
    %c0_i32_1 = arith.constant 0 : i32
    return %c0_i32, %c0_i32_0 : i32, i32
  }
  func.func @transform_3(%arg0: i32) -> (i32, i32) {
    %c0_i32 = arith.constant 0 : i32
    %c0_i32_0 = arith.constant 0 : i32
    %c0_i32_1 = arith.constant 0 : i32
    return %c0_i32, %c0_i32_0 : i32, i32
  }
  func.func @transform_4(%arg0: i32) -> (i32, i32) {
    %c0_i32 = arith.constant 0 : i32
    %c0_i32_0 = arith.constant 0 : i32
    %c0_i32_1 = arith.constant 0 : i32
    return %c0_i32, %c0_i32_0 : i32, i32
  }
  func.func @transform_5(%arg0: i32) -> (i32, i32) {
    %c0_i32 = arith.constant 0 : i32
    %c0_i32_0 = arith.constant 0 : i32
    %c0_i32_1 = arith.constant 0 : i32
    return %c0_i32, %c0_i32_0 : i32, i32
  }
  func.func @transform_6(%arg0: i32) -> (i32, i32) {
    %c0_i32 = arith.constant 0 : i32
    %c0_i32_0 = arith.constant 0 : i32
    %c0_i32_1 = arith.constant 0 : i32
    return %c0_i32, %c0_i32_0 : i32, i32
  }
  func.func @transform_7(%arg0: i32) -> (i32, i32) {
    %c0_i32 = arith.constant 0 : i32
    %c0_i32_0 = arith.constant 0 : i32
    %c0_i32_1 = arith.constant 0 : i32
    return %c0_i32, %c0_i32_0 : i32, i32
  }
  func.func @transform_8(%arg0: i32) -> (i32, i32) {
    %c0_i32 = arith.constant 0 : i32
    %c0_i32_0 = arith.constant 0 : i32
    return %arg0, %c0_i32 : i32, i32
  }
}

</mosaic_0001>

<bundles_post_ra>
// kernel: shared_dec_head_forward.1
= control target key start
LH: loop header
LB: loop body
LE: loop exit
PB: predicated region body
PF: predicated region fallthrough
CT: control target
= control target key end

     0   :  { %s1253_s27 = smov 0   ;;  %s1432_s0 = inlined_call_operand.vmem [shape: f32[32,32], index: 0, kind: input, shape index: {}]   ;;  %s1433_s1 = inlined_call_operand.vmem [shape: f32[32,8], index: 1, kind: input, shape index: {}]   ;;  %s1434_s2 = inlined_call_operand.vmem [shape: f32[16,128], index: 2, kind: input, shape index: {}]   ;;  %s1435_s3 = inlined_call_operand.vmem [shape: bf16[32,64], index: 3, kind: input, shape index: {}]   ;;  %s1436_s4 = inlined_call_operand.vmem [shape: bf16[64,32], index: 4, kind: input, shape index: {}]   ;;  %s1437_s5 = inlined_call_operand.vmem [shape: bf16[32,40], index: 5, kind: input, shape index: {}]   ;;  %s1438_s6 = inlined_call_operand.vmem [shape: bf16[32,32], index: 6, kind: input, shape index: {}]   ;;  %s1439_s7 = inlined_call_operand.vmem [shape: bf16[32,4], index: 7, kind: input, shape index: {}]   ;;  %s1440_s8 = inlined_call_operand.vmem [shape: f32[32,64], index: 8, kind: output, shape index: {}]  }
   0x1 LB: > { %s1019_s28 = sadd.s32 4294967295, %s1199_s27   ;;  %p1023_p0 = scmp.ge.s32.totalorder %s1199_s27, 1  ;;  %s1199_s27 = sphi %s1253_s27, %s18_s27  }
   0x2   : > { %p274_p1 = scmp.lt.s32.totalorder %s1199_s27, 3 }
   0x4   : > { %p275_p2 = pnand %p1023_p0, %p274_p1 }
   0x5   : > { %s1024_s29 = sshll.u32 (!%p275_p2), %s1019_s28, 1  ;;  %s1204_s15 = smov (!%p275_p2), 120  }
   0x6   : > { %278 = sbr.rel (%p275_p2) target bundleno = 2358 (0x936), region = 52  ;;  %p314_p3 = scmp.lt.s32.totalorder (!%p275_p2), %s1024_s29, 3 }
   0x7   : > { %s1205_s16 = smov (!%p275_p2), 32   ;;  %s1206_s17 = smov (!%p275_p2), 40  }
   0x8   : > { %s1207_s18 = smov (!%p275_p2), 41  }
   0xb   : > { %v1201_v0 = vmov 4   ;;  %s1442_s29 = smov (!%p314_p3, %s1024_s29), 3  ;;  %vm350_vm0 = vcmask 261120   ;;  %v1030_v28 = vld [vmem:[%s1434_s2] ss:$0 sm:$0xff]  ;;  %v1145_v51 = vld [vmem:[%s1435_s3 + $0x8] sm:$0xff]  }
   0xc   : > { %1144 = vset.pattern.permute.xlu0 %v1201_v0  ;;  %s1261_s30 = sshll.u32 %s1442_s29, 3  ;;  %v1031_v30 = vld [vmem:[%s1434_s2 + $0x1] ss:$0 sm:$0xff]  ;;  %v1202_v52 = vmov 0.0   ;;  %vm1203_vm1 = vmmov 0   ;;  %v1147_v54 = vld [vmem:[%s1436_s4 + $0x18] sm:$0xff]  }
   0xd   : > { %s323_s11 = scalar_lea.vmem %s1433_s1, %s1261_s30  ;;  %s317_s14 = scalar_lea.vmem %s1432_s0, %s1261_s30  ;;  %1085 = vmatprep.subr.bf16.mxu0 %v1202_v52  ;;  %1089 = vmatprep.mubr.msk.bf16.mxu0 %vm1203_vm1, %v1202_v52  ;;  %v1146_v53 = vld [vmem:[%s1435_s3] sm:$0xff]   ;;  %vm538_vm2 = vcmask 523264   ;;  %vm862_vm3 = vcmask 64512   ;;  %vm909_vm4 = vcmask 326912   ;;  %vm920_vm9 = vcmask 359744  }
   0xe   : > { %v1267_v1 = vld [vmem:[%s323_s11] sm:$0xff]  ;;  %v1270_v2 = vld [vmem:[%s323_s11 + $0x8] sm:$0xff]  ;;  %1086 = vmatpush3.bf16.msra.mxu0 %v1145_v51  ;;  %1093 = vmatprep.subr.bf16.mxu1 %v1202_v52  ;;  %s1360_s9 = scalar_lea.vmem %s1440_s8, %s1261_s30  ;;  %vm931_vm10 = vcmask 367968   ;;  %vm934_vm11 = vcmask 376168   ;;  %vm945_vm12 = vcmask 384368   ;;  %vm948_vm13 = vcmask 523640  }
   0xf   : > { %338 = vperm.xlu0 %1144, %v1267_v1   ;;  %v334_v3 = vld [vmem:[%s317_s14] sm:$0xff]  ;;  %v335_v6 = vld [vmem:[%s317_s14 + $0x8] sm:$0xff]  ;;  %1087 = vmatprep.subr.bf16.mxu0 %v1202_v52 }
  0x10   : > { %1101 = vmatprep.mubr.msk.bf16.mxu1 %vm1203_vm1, %v1202_v52  ;;  %1094 = vmatpush3.bf16.msra.mxu1 %v1147_v54  ;;  %v1032_v63 = vld [vmem:[%s1434_s2 + $0x2] ss:$0 sm:$0xff]  ;;  %v1044_v54 = vld [vmem:[%s1434_s2 + $0x4] ss:$0 sm:$0xff] }
  0x11   : > { %1095 = vmatprep.subr.bf16.mxu1 %v1202_v52 }
  0x12   : > { %1088 = vmatpush3.bf16.msra.mxu0 %v1146_v53 }
  0x13   : > { %343 = vperm.xlu0 %1144, %v1270_v2   ;;  %1105 = vmatprep.subr.bf16.mxu0 %v1202_v52 }
  0x8a   : > { %v339_v4 = vpop.permute.xlu0 %338 }
  0x8b   : > { %v346_v5 = vmul.f32 %v339_v4, %v334_v3 }
  0x8d   : > { %v351_v7 = vsel %vm350_vm0, %v346_v5, 0.0 }
  0x8e   : > { %v344_v8 = vpop.permute.xlu0 %343  ;;  %352 = vadd.xlane.f32.xlu1 %v351_v7 }
  0x8f   : > { %v347_v9 = vmul.f32 %v344_v8, %v335_v6 }
  0x91   : > { %v354_v10 = vsel %vm350_vm0, %v347_v9, 0.0 }
  0x92   : > { %355 = vadd.xlane.f32.xlu1 %v354_v10  ;;  %v1148_v10 = vld [vmem:[%s1436_s4 + $0x10] sm:$0xff]  }
  0x93   : > { %1096 = vmatpush3.bf16.msra.mxu1 %v1148_v10 }
  0x94   : > { %1097 = vmatprep.subr.bf16.mxu1 %v1202_v52 }
 0x117   : > { %v353_v11 = vpop.xlane.xlu1 %352 }
 0x118   : > { %v358_v12 = vmul.f32 0.03125, %v353_v11  ;;  %v1149_v11 = vld [vmem:[%s1436_s4 + $0x8] sm:$0xff]  }
 0x119   : > { %1098 = vmatpush3.bf16.msra.mxu1 %v1149_v11 }
 0x11a   : > { %v360_v13 = vsub.f32 %v346_v5, %v358_v12  ;;  %v1033_v5 = vld [vmem:[%s1434_s2 + $0x3] ss:$0 sm:$0xff]  ;;  %1099 = vmatprep.subr.bf16.mxu1 %v1202_v52 }
 0x11b   : > { %v356_v14 = vpop.xlane.xlu1 %355  ;;  %v1150_v12 = vld [vmem:[%s1436_s4] sm:$0xff]  }
 0x11c   : > { %v359_v15 = vmul.f32 0.03125, %v356_v14  ;;  %v362_v16 = vmul.f32 %v360_v13, %v360_v13 }
 0x11d   : > { %1100 = vmatpush3.bf16.msra.mxu1 %v1150_v12 }
 0x11e   : > { %v361_v17 = vsub.f32 %v347_v9, %v359_v15  ;;  %v364_v18 = vsel %vm350_vm0, %v362_v16, 0.0  ;;  %1121 = vmatprep.subr.bf16.mxu1 %v1202_v52 }
 0x11f   : > { %365 = vadd.xlane.f32.xlu0 %v364_v18 }
 0x120   : > { %v363_v19 = vmul.f32 %v361_v17, %v361_v17 }
 0x122   : > { %v367_v20 = vsel %vm350_vm0, %v363_v19, 0.0 }
 0x123   : > { %368 = vadd.xlane.f32.xlu1 %v367_v20 }
 0x1a8   : > { %v366_v21 = vpop.xlane.xlu0 %365 }
 0x1a9   : > { %v370_v22 = vmul.f32 0.03125, %v366_v21 }
 0x1ab   : > { %v372_v23 = vadd.f32 1e-05, %v370_v22 }
 0x1ac   : > { %v369_v24 = vpop.xlane.xlu1 %368 }
 0x1ad   : > { %1157 = vrsqrt.f32 %v372_v23  ;;  %v371_v25 = vmul.f32 0.03125, %v369_v24  ;;  %v1038_v23 = vld [vmem:[%s1434_s2 + $0x7] ss:$0 sm:$0xff] }
 0x1af   : > { %v373_v26 = vadd.f32 1e-05, %v371_v25 }
 0x1b1   : > { %1159 = vrsqrt.f32 %v373_v26 }
 0x1ba   : > { %v1158_v27 = vpop.eup %1157 }
 0x1bb   : > { %v376_v29 = vmul.f32 %v1158_v27, %v360_v13  ;;  %v1034_v13 = vld [vmem:[%s1434_s2 + $0x6] ss:$0 sm:$0xff] }
 0x1bd   : > { %v382_v31 = vmul.f32 %v1030_v28, %v376_v29 }
 0x1be   : > { %v1160_v32 = vpop.eup %1159 }
 0x1bf   : > { %v388_v33 = vadd.f32 %v1031_v30, %v382_v31  ;;  %v377_v34 = vmul.f32 %v1160_v32, %v361_v17 }
 0x1c1   : > { %v390_v35 = vmul.f32 %v388_v33, %v339_v4  ;;  %v383_v36 = vmul.f32 %v1030_v28, %v377_v34 }
 0x1c3   : > { %v394_v37 = vsel %vm350_vm0, %v390_v35, 0.0  ;;  %v389_v38 = vadd.f32 %v1031_v30, %v383_v36 }
 0x1c4   : > { %395 = vadd.xlane.f32.xlu1 %v394_v37 }
 0x1c5   : > { %v391_v39 = vmul.f32 %v389_v38, %v344_v8 }
 0x1c7   : > { %v397_v40 = vsel %vm350_vm0, %v391_v39, 0.0 }
 0x1c8   : > { %398 = vadd.xlane.f32.xlu1 %v397_v40 }
 0x24d   : > { %v396_v41 = vpop.xlane.xlu1 %395 }
 0x24e   : > { %v400_v42 = vmul.f32 0.03125, %v396_v41 }
 0x250   : > { %v402_v43 = vsub.f32 %v390_v35, %v400_v42 }
 0x251   : > { %v399_v44 = vpop.xlane.xlu1 %398 }
 0x252   : > { %v401_v45 = vmul.f32 0.03125, %v399_v44  ;;  %v404_v46 = vmul.f32 %v402_v43, %v402_v43  ;;  %v1151_v44 = vld [vmem:[%s1437_s5 + $0x8] sm:$0xff]  }
 0x254   : > { %v403_v47 = vsub.f32 %v391_v39, %v401_v45  ;;  %v406_v48 = vsel %vm350_vm0, %v404_v46, 0.0  ;;  %v1152_v45 = vld [vmem:[%s1437_s5] sm:$0xff]  }
 0x255   : > { %407 = vadd.xlane.f32.xlu1 %v406_v48 }
 0x256   : > { %v405_v49 = vmul.f32 %v403_v47, %v403_v47 }
 0x258   : > { %v409_v50 = vsel %vm350_vm0, %v405_v49, 0.0 }
 0x259   : > { %410 = vadd.xlane.f32.xlu1 %v409_v50 }
 0x2de   : > { %v408_v55 = vpop.xlane.xlu1 %407 }
 0x2df   : > { %v412_v56 = vmul.f32 0.03125, %v408_v55 }
 0x2e1   : > { %v414_v57 = vadd.f32 1e-05, %v412_v56  ;;  %v1045_v56 = vld [vmem:[%s1434_s2 + $0x5] ss:$0 sm:$0xff] }
 0x2e2   : > { %v411_v58 = vpop.xlane.xlu1 %410 }
 0x2e3   : > { %1161 = vrsqrt.f32 %v414_v57  ;;  %v413_v59 = vmul.f32 0.03125, %v411_v58 }
 0x2e5   : > { %v415_v60 = vadd.f32 1e-05, %v413_v59 }
 0x2e7   : > { %1163 = vrsqrt.f32 %v415_v60 }
 0x2f0   : > { %v1162_v61 = vpop.eup %1161 }
 0x2f1   : > { %v418_v62 = vmul.f32 %v1162_v61, %v402_v43 }
 0x2f3   : > { %v424_v4 = vmul.f32 %v1032_v63, %v418_v62 }
 0x2f4   : > { %v1164_v0 = vpop.eup %1163 }
 0x2f5   : > { %v419_v3 = vmul.f32 %v1164_v0, %v403_v47  ;;  %v430_v7 = vadd.f32 %v1033_v5, %v424_v4  ;;  %v1153_v0 = vld [vmem:[%s1438_s6 + $0x8] sm:$0xff]  }
 0x2f6   : > { %v1046_v4 = vld [vmem:[%s1434_s2 + $0x8] ss:$0 sm:$0xff] }
 0x2f7   : > { %v425_v6 = vmul.f32 %v1032_v63, %v419_v3  ;;  %v1154_v3 = vld [vmem:[%s1438_s6] sm:$0xff]  }
 0x2f9   : > { %v431_v8 = vadd.f32 %v1033_v5, %v425_v6 }
 0x2fb   : > { %v432_v9 = vpack.c.bf16 %v431_v8, %v430_v7 }
 0x2fd   : > { %1090 = vmatmul.mubr.msk.bf16.vlgmr.msra.gmra.mxu0 %vm350_vm0, %v432_v9 }
 0x2fe   : > { %1109 = vmatprep.mubr.msk.bf16.mxu0 %vm1203_vm1, %v1202_v52  ;;  %1106 = vmatpush3.bf16.msra.mxu0 %v1151_v44  ;;  %v831_v44 = vmax.f32 %v1270_v2, 0.0 }
 0x2ff   : > { %1107 = vmatprep.subr.bf16.mxu0 %v1202_v52 }
 0x302   : > { %1108 = vmatpush3.bf16.msra.mxu0 %v1152_v45 }
 0x303   : > { %1113 = vmatprep.subr.bf16.mxu0 %v1202_v52 }
 0x3bd   : > { %v491_v14 = vpop.f32.mrf.mxu0 }
 0x3be   : > { %v492_v16 = vadd.f32 %v1034_v13, %v491_v14 }
 0x3bf   : > { %v1091_v15 = vpop.f32.mrf.mxu0 }
 0x3c0   : > { %v498_v20 = vmax.f32 %v492_v16, 0.0 }
 0x3c1   : > { %v494_v17 = vpop.f32.mrf.mxu0 }
 0x3c2   : > { %v495_v18 = vadd.f32 %v1034_v13, %v494_v17 }
 0x3c3   : > { %v1092_v19 = vpop.f32.mrf.mxu0 }
 0x3c4   : > { %v499_v21 = vmax.f32 %v495_v18, 0.0 }
 0x3c6   : > { %v500_v22 = vpack.c.bf16 %v499_v21, %v498_v20 }
 0x3c8   : > { %1102 = vmatmul.mubr.msk.bf16.vlgmr.msra.gmra.mxu1 %vm538_vm2, %v500_v22 }
 0x3c9   : > { %1125 = vmatprep.mubr.msk.bf16.mxu1 %vm1203_vm1, %v1202_v52 }
 0x488   : > { %v576_v24 = vpop.f32.mrf.mxu1 }
 0x489   : > { %v577_v25 = vadd.f32 %v1038_v23, %v576_v24 }
 0x48a   : > { %v1103_v26 = vpop.f32.mrf.mxu1 }
 0x48b   : > { %v583_v27 = vadd.f32 %v577_v25, %v430_v7 }
 0x48c   : > { %v579_v28 = vpop.f32.mrf.mxu1 }
 0x48d   : > { %v580_v29 = vadd.f32 %v1038_v23, %v579_v28  ;;  %v587_v30 = vsel %vm350_vm0, %v583_v27, 0.0 }
 0x48e   : > { %588 = vadd.xlane.f32.xlu1 %v587_v30  ;;  %v1104_v31 = vpop.f32.mrf.mxu1  ;;  %v1155_v30 = vld [vmem:[%s1439_s7 + $0x8] sm:$0xff]  }
 0x48f   : > { %v584_v32 = vadd.f32 %v580_v29, %v431_v8  ;;  %1122 = vmatpush3.bf16.msra.mxu1 %v1155_v30  ;;  %v1156_v31 = vld [vmem:[%s1439_s7] sm:$0xff]  }
 0x490   : > { %1123 = vmatprep.subr.bf16.mxu1 %v1202_v52 }
 0x491   : > { %v590_v33 = vsel %vm350_vm0, %v584_v32, 0.0 }
 0x492   : > { %591 = vadd.xlane.f32.xlu1 %v590_v33 }
 0x493   : > { %1124 = vmatpush3.bf16.msra.mxu1 %v1156_v31 }
 0x517   : > { %v589_v34 = vpop.xlane.xlu1 %588 }
 0x518   : > { %v593_v35 = vmul.f32 0.03125, %v589_v34 }
 0x51a   : > { %v595_v36 = vsub.f32 %v583_v27, %v593_v35 }
 0x51b   : > { %v592_v37 = vpop.xlane.xlu1 %591 }
 0x51c   : > { %v594_v38 = vmul.f32 0.03125, %v592_v37  ;;  %v597_v39 = vmul.f32 %v595_v36, %v595_v36 }
 0x51e   : > { %v596_v40 = vsub.f32 %v584_v32, %v594_v38  ;;  %v599_v41 = vsel %vm350_vm0, %v597_v39, 0.0  ;;  %v1050_v32 = vld [vmem:[%s1434_s2 + $0x9] ss:$0 sm:$0xff] }
 0x51f   : > { %600 = vadd.xlane.f32.xlu1 %v599_v41 }
 0x520   : > { %v598_v42 = vmul.f32 %v596_v40, %v596_v40 }
 0x522   : > { %v602_v43 = vsel %vm350_vm0, %v598_v42, 0.0  ;;  %v830_v42 = vmax.f32 %v1267_v1, 0.0 }
 0x523   : > { %603 = vadd.xlane.f32.xlu0 %v602_v43 }
 0x524   : > { %v832_v43 = vmin.f32 %v830_v42, 1.0 }
 0x526   : > { %v836_v45 = vsub.f32 1.0, %v832_v43 }
 0x5a8   : > { %v601_v46 = vpop.xlane.xlu1 %600 }
 0x5a9   : > { %v605_v47 = vmul.f32 0.03125, %v601_v46  ;;  %v833_v46 = vmin.f32 %v831_v44, 1.0 }
 0x5ab   : > { %v607_v48 = vadd.f32 1e-05, %v605_v47  ;;  %v838_v47 = vmax.f32 %v836_v45, 1e-05 }
 0x5ac   : > { %v604_v49 = vpop.xlane.xlu0 %603 }
 0x5ad   : > { %1165 = vrsqrt.f32 %v607_v48  ;;  %v606_v50 = vmul.f32 0.03125, %v604_v49  ;;  %v837_v48 = vsub.f32 1.0, %v833_v46 }
 0x5af   : > { %v608_v51 = vadd.f32 1e-05, %v606_v50  ;;  %v839_v49 = vmax.f32 %v837_v48, 1e-05  ;;  %v834_v50 = vmax.f32 %v832_v43, 1e-05 }
 0x5b1   : > { %1167 = vrsqrt.f32 %v608_v51 }
 0x5ba   : > { %v1166_v53 = vpop.eup %1165 }
 0x5bb   : > { %v611_v55 = vmul.f32 %v1166_v53, %v595_v36  ;;  %v835_v53 = vmax.f32 %v833_v46, 1e-05 }
 0x5bd   : > { %v617_v57 = vmul.f32 %v1044_v54, %v611_v55 }
 0x5be   : > { %v1168_v58 = vpop.eup %1167 }
 0x5bf   : > { %v612_v59 = vmul.f32 %v1168_v58, %v596_v40  ;;  %v623_v60 = vadd.f32 %v1045_v56, %v617_v57 }
 0x5c1   : > { %v618_v61 = vmul.f32 %v1044_v54, %v612_v59  ;;  %899 = vst.msk [vmem:[%s1360_s9] sm:$0xff] %vm350_vm0, %v623_v60 }
 0x5c3   : > { %v624_v62 = vadd.f32 %v1045_v56, %v618_v61 }
 0x5c5   : > { %v625_v63 = vpack.c.bf16 %v624_v62, %v623_v60  ;;  %900 = vst.msk [vmem:[%s1360_s9 + $0x8] sm:$0xff] %vm350_vm0, %v624_v62 }
 0x5c7   : > { %1110 = vmatmul.mubr.msk.bf16.vlgmr.msra.gmra.mxu0 %vm350_vm0, %v625_v63 }
 0x5c8   : > { %1117 = vmatprep.mubr.msk.bf16.mxu0 %vm1203_vm1, %v1202_v52  ;;  %1114 = vmatpush3.bf16.msra.mxu0 %v1153_v0 }
 0x5c9   : > { %1115 = vmatprep.subr.bf16.mxu0 %v1202_v52 }
 0x5cc   : > { %1116 = vmatpush3.bf16.msra.mxu0 %v1154_v3 }
 0x687   : > { %v684_v5 = vpop.f32.mrf.mxu0 }
 0x688   : > { %v685_v6 = vadd.f32 %v1046_v4, %v684_v5 }
 0x689   : > { %v1111_v7 = vpop.f32.mrf.mxu0 }
 0x68a   : > { %v863_v8 = vsel %vm862_vm3, %v685_v6, -inf  ;;  %v691_v12 = vmax.f32 %v685_v6, 0.0 }
 0x68b   : > { %864 = vmax.xlane.f32.xlu0 %v863_v8  ;;  %v687_v9 = vpop.f32.mrf.mxu0 }
 0x68c   : > { %v688_v10 = vadd.f32 %v1046_v4, %v687_v9 }
 0x68d   : > { %v1112_v11 = vpop.f32.mrf.mxu0 }
 0x68e   : > { %v692_v13 = vmax.f32 %v688_v10, 0.0  ;;  %v866_v14 = vsel %vm862_vm3, %v688_v10, -inf }
 0x68f   : > { %867 = vmax.xlane.f32.xlu0 %v866_v14 }
 0x690   : > { %v693_v15 = vpack.c.bf16 %v692_v13, %v691_v12 }
 0x692   : > { %704 = vrot.lane.b32.xlu1 %v693_v15, %s1204_s15 }
 0x696   : > { %905 = vrot.lane.b32.xlu1 %v688_v10, %s1205_s16 }
 0x6a5   : > { %903 = vrot.lane.b32.xlu0 %v685_v6, %s1205_s16 }
 0x704   : > { %v705_v16 = vpop.permute.xlu1 %704 }
 0x705   : > { %1118 = vmatmul.mubr.msk.bf16.vlgmr.msra.gmra.mxu0 %vm350_vm0, %v705_v16 }
 0x708   : > { %v906_v21 = vpop.permute.xlu1 %905 }
 0x709   : > { %911 = vst.msk [vmem:[%s1360_s9 + $0x8] sm:$0xff] %vm909_vm4, %v906_v21 }
 0x714   : > { %v865_v17 = vpop.xlane.xlu0 %864 }
 0x715   : > { %v1060_v57 = vmul.f32 -1.442695, %v865_v17 }
 0x718   : > { %v868_v18 = vpop.xlane.xlu0 %867 }
 0x719   : > { %v1061_v19 = vmul.f32 -1.442695, %v868_v18 }
 0x71b   : > { %1169 = vpow2.f32 %v1061_v19 }
 0x71c   : > { %v904_v20 = vpop.permute.xlu0 %903 }
 0x71d   : > { %910 = vst.msk [vmem:[%s1360_s9] sm:$0xff] %vm909_vm4, %v904_v20 }
 0x728   : > { %v1170_v22 = vpop.eup %1169 }
 0x729   : > { %v876_v23 = vadd.f32 1.0, %v1170_v22 }
 0x72b   : > { %1171 = vrcp.f32 %v876_v23 }
 0x72c   : > { %1173 = vrcp.f32 %v838_v47 }
 0x72d   : > { %1175 = vrcp.f32 %v839_v49 }
 0x738   : > { %v1172_v24 = vpop.eup %1171 }
 0x739   : > { %vm882_vm5 = vcmp.ge.f32.partialorder %v1172_v24, 0.5  ;;  %vm890_vm6 = vcmp.ge.f32.partialorder %v1172_v24, 0.0  ;;  %v1174_v51 = vpop.eup %1173 }
 0x73a   : > { %v1383_v25 = vsel %vm882_vm5, 1.0, %v1202_v52  ;;  %v1065_v27 = vsel %vm890_vm6, 1.0, %v1202_v52  ;;  %v841_v54 = vmul.f32 %v1174_v51, %v834_v50  ;;  %v1176_v55 = vpop.eup %1175 }
 0x73b   : > { %v888_v26 = vsub.f32 %v1270_v2, %v1383_v25  ;;  %v898_v29 = vadd.f32 %v1383_v25, %v1270_v2  ;;  %v843_v56 = vmul.f32 %v1176_v55, %v835_v53  ;;  %v1054_v2 = vld [vmem:[%s1434_s2 + $0xa] ss:$0 sm:$0xff] }
 0x73c   : > { %1177 = vlog2.f32 %v841_v54 }
 0x73d   : > { %v896_v28 = vmul.f32 %v1065_v27, %v888_v26  ;;  %1179 = vlog2.f32 %v843_v56 }
 0x73e   : > { %1181 = vpow2.f32 %v1060_v57 }
 0x73f   : > { %927 = vrot.lane.b32.xlu0 %v896_v28, %s1206_s17 }
 0x743   : > { %941 = vrot.lane.b32.xlu0 %v898_v29, %s1207_s18 }
 0x749   : > { %v1178_v58 = vpop.eup %1177 }
 0x74a   : > { %v845_v59 = vmul.f32 0.6931472, %v1178_v58  ;;  %v1180_v60 = vpop.eup %1179 }
 0x74b   : > { %v847_v3 = vmul.f32 0.6931472, %v1180_v60  ;;  %v1182_v10 = vpop.eup %1181 }
 0x74c   : > { %v875_v11 = vadd.f32 1.0, %v1182_v10 }
 0x7b1   : > { %v928_v27 = vpop.permute.xlu0 %927 }
 0x7b5   : > { %v942_v29 = vpop.permute.xlu0 %941 }
 0x7c5   : > { %v755_v33 = vpop.f32.mrf.mxu0 }
 0x7c6   : > { %v756_v35 = vadd.f32 %v1050_v32, %v755_v33 }
 0x7c7   : > { %v1119_v34 = vpop.f32.mrf.mxu0 }
 0x7c8   : > { %v762_v39 = vmax.f32 %v756_v35, 0.0 }
 0x7c9   : > { %v758_v36 = vpop.f32.mrf.mxu0 }
 0x7ca   : > { %v759_v37 = vadd.f32 %v1050_v32, %v758_v36 }
 0x7cb   : > { %v1120_v38 = vpop.f32.mrf.mxu0 }
 0x7cc   : > { %v763_v40 = vmax.f32 %v759_v37, 0.0 }
 0x7ce   : > { %v764_v41 = vpack.c.bf16 %v763_v40, %v762_v39 }
 0x7d0   : > { %1126 = vmatmul.mubr.msk.bf16.vlgmr.msra.gmra.mxu1 %vm350_vm0, %v764_v41 }
 0x890   : > { %v823_v61 = vpop.f32.mrf.mxu1 }
 0x891   : > { %v824_v62 = vadd.f32 %v1054_v2, %v823_v61 }
 0x892   : > { %v1127_v63 = vpop.f32.mrf.mxu1 }
 0x893   : > { %v848_v0 = vadd.f32 %v845_v59, %v824_v62 }
 0x894   : > { %v826_v4 = vpop.f32.mrf.mxu1 }
 0x895   : > { %v1058_v5 = vmul.f32 -1.442695, %v848_v0  ;;  %v827_v6 = vadd.f32 %v1054_v2, %v826_v4 }
 0x896   : > { %v1128_v7 = vpop.f32.mrf.mxu1 }
 0x897   : > { %1183 = vpow2.f32 %v1058_v5  ;;  %v849_v8 = vadd.f32 %v847_v3, %v827_v6 }
 0x899   : > { %v1059_v9 = vmul.f32 -1.442695, %v849_v8 }
 0x89b   : > { %1185 = vpow2.f32 %v1059_v9 }
 0x89c   : > { %1187 = vrcp.f32 %v875_v11 }
 0x8a4   : > { %v1184_v12 = vpop.eup %1183 }
 0x8a5   : > { %v856_v13 = vadd.f32 1.0, %v1184_v12 }
 0x8a7   : > { %1189 = vrcp.f32 %v856_v13 }
 0x8a8   : > { %v1186_v14 = vpop.eup %1185 }
 0x8a9   : > { %v857_v15 = vadd.f32 1.0, %v1186_v14  ;;  %v1188_v16 = vpop.eup %1187 }
 0x8aa   : > { %vm881_vm7 = vcmp.ge.f32.partialorder %v1188_v16, 0.5  ;;  %vm889_vm8 = vcmp.ge.f32.partialorder %v1188_v16, 0.0 }
 0x8ab   : > { %1191 = vrcp.f32 %v857_v15  ;;  %v1062_v18 = vsel %vm881_vm7, 1.0, %v1202_v52  ;;  %v1064_v21 = vsel %vm889_vm8, 1.0, %v1202_v52 }
 0x8ac   : > { %v887_v19 = vsub.f32 %v1267_v1, %v1062_v18  ;;  %v897_v23 = vadd.f32 %v1062_v18, %v1267_v1 }
 0x8ae   : > { %v895_v22 = vmul.f32 %v1064_v21, %v887_v19 }
 0x8b4   : > { %v1190_v17 = vpop.eup %1189 }
 0x8b5   : > { %914 = vrot.lane.b32.xlu1 %v1190_v17, %s1206_s17 }
 0x8b8   : > { %v1192_v20 = vpop.eup %1191 }
 0x8b9   : > { %916 = vrot.lane.b32.xlu1 %v1192_v20, %s1206_s17 }
 0x8bd   : > { %925 = vrot.lane.b32.xlu1 %v895_v22, %s1206_s17 }
 0x8c1   : > { %939 = vrot.lane.b32.xlu1 %v897_v23, %s1207_s18 }
 0x927   : > { %v915_v24 = vpop.permute.xlu1 %914 }
 0x928   : > { %921 = vst.msk [vmem:[%s1360_s9] sm:$0xff] %vm920_vm9, %v915_v24 }
 0x92b   : > { %v917_v26 = vpop.permute.xlu1 %916 }
 0x92c   : > { %922 = vst.msk [vmem:[%s1360_s9 + $0x8] sm:$0xff] %vm920_vm9, %v917_v26 }
 0x92d   : > { %933 = vst.msk [vmem:[%s1360_s9 + $0x8] sm:$0xff] %vm931_vm10, %v928_v27 }
 0x92e   : > { %936 = vst.msk [vmem:[%s1360_s9 + $0x8] sm:$0xff] %vm934_vm11, %v1383_v25 }
 0x92f   : > { %v926_v28 = vpop.permute.xlu1 %925  ;;  %947 = vst.msk [vmem:[%s1360_s9 + $0x8] sm:$0xff] %vm945_vm12, %v942_v29 }
 0x930   : > { %932 = vst.msk [vmem:[%s1360_s9] sm:$0xff] %vm931_vm10, %v926_v28 }
 0x931   : > { %935 = vst.msk [vmem:[%s1360_s9] sm:$0xff] %vm934_vm11, %v1062_v18 }
 0x932   : > { %950 = vst.msk [vmem:[%s1360_s9 + $0x8] sm:$0xff] %vm948_vm13, %v1202_v52 }
 0x933   : > { %v940_v1 = vpop.permute.xlu1 %939 }
 0x934   : > { %946 = vst.msk [vmem:[%s1360_s9] sm:$0xff] %vm945_vm12, %v940_v1 }
 0x935   : > { %949 = vst.msk [vmem:[%s1360_s9] sm:$0xff] %vm948_vm13, %v1202_v52 }
 0x936 PF: > { %s18_s27 = sadd.s32 1, %s1199_s27  }
 0x937   : > { %p15_p4 = scmp.ge.s32.totalorder %s18_s27, 4  }
 0x939   :  { %17 = sbr.rel (!%p15_p4) target bundleno = 1 (0x1), region = 85 }

</bundles_post_ra>
